<compile_context>
chip_gen: v7x
topology: tpu7x:2x2x1
jax: 0.10.0
libtpu: 0.0.40
codegen_flags: <defaults>
</compile_context>

<pallas_src>
import functools

import jax
import jax.numpy as jnp
from jax import lax
from jax.experimental import pallas as pl
from jax.experimental.pallas import tpu as pltpu


def _cca_kernel(x_ref, w_ref, b_ref, diff_ref, y_ref, *, H, W, neg_slope):
    """Processes Nb batch elements per grid step.

    x_ref    : (Nb, C, HWp)  input block (f32 or bf16), flattened spatial on lanes
    w_ref    : (9, C, C)     conv weights, w_ref[ky*3+kx] = weight[:, :, ky, kx]
    b_ref    : (C, 1)        conv bias (f32)
    diff_ref : (Nb, C, HWp)  output: x - y
    y_ref    : (Nb, C, HWp)  output: y = LeakyReLU(conv3(x))
    """
    x = x_ref[...]
    Nb, C, HWp = x.shape

    # Zero-padding boundary masks, from the flattened lane position (computed once per
    # grid step, VPU-cheap).  Valid for p < H*W; tail lanes (HWp > H*W) only ever feed
    # taps that are masked anyway, and their own outputs are sliced off by the wrapper.
    p = lax.broadcasted_iota(jnp.int32, (1, 1, HWp), 2)
    w_idx = p % W
    not_left = w_idx != 0                       # column w-1 exists
    not_right = w_idx != (W - 1)                # column w+1 exists
    not_top = p >= W                            # row h-1 exists
    not_bottom = p < (H - 1) * W                # row h+1 exists

    # 9 shifted + masked taps over the whole (Nb, C, HWp) slab.  Lane rolls (XLU) act
    # independently on every (n, c) image plane, and any wrap across row/image
    # boundaries is killed by the masks — so no cross-image bleed.
    taps = []
    for dy, row_ok in ((-1, not_top), (0, None), (1, not_bottom)):
        for dx, col_ok in ((-1, not_left), (0, None), (1, not_right)):
            s = dy * W + dx
            piece = x if s == 0 else pltpu.roll(x, shift=(-s) % HWp, axis=2)
            ok = row_ok
            if col_ok is not None:
                ok = col_ok if ok is None else (ok & col_ok)
            if ok is not None:
                piece = jnp.where(ok, piece, jnp.zeros_like(piece))
            taps.append(piece)

    bias = b_ref[...].astype(jnp.float32)       # (C, 1), loaded once (resident block)

    # Per batch element: nine per-tap (C, C) @ (C, HWp) MXU matmuls accumulated in f32.
    # No (9C, HWp) im2col strip, no unaligned sublane concatenate.
    for b in range(Nb):
        acc = jnp.zeros((C, HWp), jnp.float32)
        for t in range(9):
            acc = acc + jnp.dot(w_ref[t], taps[t][b],
                                preferred_element_type=jnp.float32)
        acc = acc + bias                                    # bias once, broadcast on lanes
        y = jnp.where(acc > 0, acc, neg_slope * acc)        # LeakyReLU(0.05) in f32
        diff = x[b].astype(jnp.float32) - y                 # residual in f32
        y_ref[b] = y.astype(y_ref.dtype)
        diff_ref[b] = diff.astype(diff_ref.dtype)


def _largest_divisor_leq(n, cap):
    cap = max(1, min(n, cap))
    for d in range(cap, 0, -1):
        if n % d == 0:
            return d
    return 1


def _vmem_capacity_bytes():
    # v7x has 64 MiB per TensorCore (vs 128 MiB on v5e/v6e); clamp requests against the
    # real capacity instead of a hard-coded 128 MiB.
    try:
        cap = int(getattr(pltpu.get_tpu_info(), "vmem_capacity_bytes", 0))
        if cap > 0:
            return cap
    except Exception:
        pass
    return 64 * 1024 * 1024   # conservative fallback (v7x per-TC)


def cca_layer(x_nchw, weight, bias, neg_slope=0.05, *, batch_block=8, mxu_dtype=None):
    """Pallas implementation of CCALayer.forward: (x - y, y), y = lrelu(conv3x3(x)).

    x_nchw : (N, C, H, W)
    weight : (C, C, 3, 3)   (PyTorch Conv2d OIHW layout)
    bias   : (C,)
    mxu_dtype : optional dtype (e.g. jnp.bfloat16) for the MXU operands (x and weights).
        Accumulation / bias / LeakyReLU / residual always stay in f32.
    """
    N, C, H, W = x_nchw.shape
    HW = H * W
    HWp = ((HW + 127) // 128) * 128             # lane-dense (unmasked) stores

    in_dtype = x_nchw.dtype if mxu_dtype is None else jnp.dtype(mxu_dtype)
    out_dtype = x_nchw.dtype
    itemsize = jnp.dtype(in_dtype).itemsize
    out_itemsize = jnp.dtype(out_dtype).itemsize

    # Free reshape (same contiguous layout); pad flattened spatial axis only if needed.
    x_flat = x_nchw.reshape(N, C, HW)
    if HWp != HW:
        x_flat = jnp.pad(x_flat, ((0, 0), (0, 0), (0, HWp - HW)))
    x_flat = x_flat.astype(in_dtype)

    # (C_out, C_in, 3, 3) -> (9, C_out, C_in): w9[ky*3+kx] = weight[:, :, ky, kx].
    w9 = jnp.transpose(weight, (2, 3, 0, 1)).reshape(9, C, C).astype(in_dtype)
    b_col = bias.reshape(C, 1).astype(jnp.float32)

    # --- pick the batch block: bigger DMAs / fewer grid steps, but keep the live set
    #     (x + 9 taps + f32 acc/y/diff + double-buffered I/O) inside VMEM. ---
    vmem_cap = _vmem_capacity_bytes()

    def step_bytes(nb):
        slab = nb * C * HWp
        io = 2 * slab * itemsize + 2 * 2 * slab * out_itemsize   # dbl-buffered in + 2 outs
        live = 10 * slab * itemsize + 3 * slab * 4               # x + 9 taps + f32 temps
        return io + live + 9 * C * C * itemsize + C * 4

    budget = max(vmem_cap // 2, 8 * 1024 * 1024)
    nb = _largest_divisor_leq(N, batch_block)
    while nb > 1 and step_bytes(nb) > budget:
        nb = _largest_divisor_leq(N, nb - 1)

    grid = (N // nb,)
    vmem_limit = int(min(max(4 * step_bytes(nb), 32 * 1024 * 1024),
                         vmem_cap - 8 * 1024 * 1024))

    kernel = functools.partial(_cca_kernel, H=H, W=W, neg_slope=neg_slope)

    out_shapes = (
        jax.ShapeDtypeStruct((N, C, HWp), out_dtype),   # diff = x - y
        jax.ShapeDtypeStruct((N, C, HWp), out_dtype),   # y
    )

    cost = pl.CostEstimate(
        flops=2 * N * C * 9 * C * HW + 6 * N * C * HW,
        transcendentals=0,
        bytes_accessed=(N * C * HWp * itemsize
                        + 2 * N * C * HWp * out_itemsize
                        + 9 * C * C * itemsize + C * 4),
    )

    grid_spec = pltpu.PrefetchScalarGridSpec(
        num_scalar_prefetch=0,
        grid=grid,
        in_specs=[
            pl.BlockSpec((nb, C, HWp), lambda n: (n, 0, 0)),
            pl.BlockSpec((9, C, C), lambda n: (0, 0, 0)),   # resident across the grid
            pl.BlockSpec((C, 1), lambda n: (0, 0)),         # resident across the grid
        ],
        out_specs=[
            pl.BlockSpec((nb, C, HWp), lambda n: (n, 0, 0)),
            pl.BlockSpec((nb, C, HWp), lambda n: (n, 0, 0)),
        ],
    )

    diff_flat, y_flat = pl.pallas_call(
        kernel,
        out_shape=out_shapes,
        grid_spec=grid_spec,
        cost_estimate=cost,
        compiler_params=pltpu.CompilerParams(
            dimension_semantics=("parallel",),      # batch blocks shard across TCs
            vmem_limit_bytes=vmem_limit,
        ),
    )(x_flat, w9, b_col)

    if HWp != HW:
        diff_flat = diff_flat[:, :, :HW]
        y_flat = y_flat[:, :, :HW]
    return diff_flat.reshape(N, C, H, W), y_flat.reshape(N, C, H, W)


def _reference(x_nchw, weight, bias, neg_slope=0.05):
    """Pure-JAX reference (mirrors torch Conv2d(pad=1) + LeakyReLU)."""
    y = lax.conv_general_dilated(
        x_nchw, weight,
        window_strides=(1, 1),
        padding=((1, 1), (1, 1)),
        dimension_numbers=("NCHW", "OIHW", "NCHW"),
    ) + bias.reshape(1, -1, 1, 1)
    y = jnp.where(y > 0, y, neg_slope * y)
    return x_nchw - y, y


if __name__ == "__main__":
    key = jax.random.PRNGKey(0)

    def make_inputs(k, N, C, H, W):
        kx, kw, kb = jax.random.split(k, 3)
        x = jax.random.normal(kx, (N, C, H, W), dtype=jnp.float32)
        weight = 0.1 * jax.random.normal(kw, (C, C, 3, 3), dtype=jnp.float32)
        b = 0.1 * jax.random.normal(kb, (C,), dtype=jnp.float32)
        return x, weight, b

    configs = [
        # (N, C, H,  W,  kwargs,                              tolerance)
        (2, 4, 16, 16, dict(), 1e-4),                            # primary shape
        (3, 4, 10, 10, dict(batch_block=1), 1e-4),               # lane padding + multi-step grid
        (2, 8, 12, 12, dict(mxu_dtype=jnp.bfloat16), 5e-2),      # bf16 MXU operands
    ]

    for idx, (N, C, H, W, kw, tol) in enumerate(configs):
        key, sub = jax.random.split(key)
        x, weight, b = make_inputs(sub, N, C, H, W)
        run = jax.jit(functools.partial(cca_layer, **kw))
        diff, y = run(x, weight, b)
        jax.block_until_ready((diff, y))
        diff_ref, y_ref = _reference(x, weight, b)
        assert jnp.allclose(y, y_ref, atol=tol, rtol=tol), f"y mismatch (config {idx})"
        assert jnp.allclose(diff, diff_ref, atol=tol, rtol=tol), f"diff mismatch (config {idx})"

    print("KERNEL_OK")
</pallas_src>

<mosaic_0001>
module attributes {stable_mosaic.version = 11 : i64} {
  func.func @_cca_kernel(%arg0: i32, %arg1: memref<2x4x256xf32, #tpu.memory_space<vmem>>, %arg2: memref<9x4x4xf32, #tpu.memory_space<vmem>>, %arg3: memref<4x1xf32, #tpu.memory_space<vmem>>, %arg4: memref<2x4x256xf32, #tpu.memory_space<vmem>>, %arg5: memref<2x4x256xf32, #tpu.memory_space<vmem>>) attributes {dimension_semantics = [#tpu.dimension_semantics<parallel>], iteration_bounds = array<i64: 1>, scalar_prefetch = 0 : i64, scratch_operands = 0 : i64, tpu.core_type = #tpu.core_type<tc>, window_params = [{transform_indices = @transform_0, window_bounds = array<i64: 2, 4, 256>}, {pipeline_mode = #tpu.pipeline_mode<synchronous>, transform_indices = @transform_1, window_bounds = array<i64: 9, 4, 4>}, {pipeline_mode = #tpu.pipeline_mode<synchronous>, transform_indices = @transform_2, window_bounds = array<i64: 4, 1>}, {transform_indices = @transform_3, window_bounds = array<i64: 2, 4, 256>}, {transform_indices = @transform_4, window_bounds = array<i64: 2, 4, 256>}]} {
    %c0 = arith.constant 0 : index
    %c0_0 = arith.constant 0 : index
    %c0_1 = arith.constant 0 : index
    %0 = vector.load %arg1[%c0, %c0_0, %c0_1] : memref<2x4x256xf32, #tpu.memory_space<vmem>>, vector<2x4x256xf32>
    %1 = tpu.iota {dimensions = array<i32: 2>} : vector<1x1x256xi32>
    %c16_i32 = arith.constant 16 : i32
    %c0_i32 = arith.constant 0 : i32
    %2 = arith.cmpi eq, %c16_i32, %c0_i32 : i32
    %c1_i32 = arith.constant 1 : i32
    %3 = arith.select %2, %c1_i32, %c16_i32 : i32
    %4 = vector.broadcast %3 : i32 to vector<1x1x256xi32>
    %5 = arith.remsi %1, %4 : vector<1x1x256xi32>
    %c0_i32_2 = arith.constant 0 : i32
    %6 = vector.broadcast %c0_i32_2 : i32 to vector<1x1x256xi32>
    %7 = arith.cmpi ne, %5, %6 : vector<1x1x256xi32>
    %c0_i32_3 = arith.constant 0 : i32
    %8 = vector.broadcast %c0_i32_3 : i32 to vector<1x1x256xi32>
    %9 = arith.cmpi slt, %5, %8 : vector<1x1x256xi32>
    %c0_i32_4 = arith.constant 0 : i32
    %10 = arith.cmpi slt, %3, %c0_i32_4 : i32
    %11 = vector.broadcast %10 : i1 to vector<1x1x256xi1>
    %12 = vector.broadcast %11 : vector<1x1x256xi1> to vector<1x1x256xi1>
    %13 = arith.xori %9, %12 : vector<1x1x256xi1>
    %14 = arith.andi %13, %7 : vector<1x1x256xi1>
    %15 = vector.broadcast %3 : i32 to vector<1x1x256xi32>
    %16 = arith.addi %5, %15 : vector<1x1x256xi32>
    %17 = arith.select %14, %16, %5 : vector<1x1x256xi1>, vector<1x1x256xi32>
    %c0_i32_5 = arith.constant 0 : i32
    %18 = vector.broadcast %c0_i32_5 : i32 to vector<1x1x256xi32>
    %19 = arith.cmpi ne, %17, %18 : vector<1x1x256xi32>
    %c15_i32 = arith.constant 15 : i32
    %20 = vector.broadcast %c15_i32 : i32 to vector<1x1x256xi32>
    %21 = arith.cmpi ne, %17, %20 : vector<1x1x256xi32>
    %c16_i32_6 = arith.constant 16 : i32
    %22 = vector.broadcast %c16_i32_6 : i32 to vector<1x1x256xi32>
    %23 = arith.cmpi sge, %1, %22 : vector<1x1x256xi32>
    %c240_i32 = arith.constant 240 : i32
    %24 = vector.broadcast %c240_i32 : i32 to vector<1x1x256xi32>
    %25 = arith.cmpi slt, %1, %24 : vector<1x1x256xi32>
    %c17_i32 = arith.constant 17 : i32
    %26 = tpu.dynamic_rotate %0 by %c17_i32 dim 2 : vector<2x4x256xf32>, i32 -> vector<2x4x256xf32>
    %27 = arith.andi %23, %19 : vector<1x1x256xi1>
    %cst = arith.constant 0.000000e+00 : f32
    %28 = vector.broadcast %cst : f32 to vector<2x4x256xf32>
    %29 = vector.shape_cast %27 : vector<1x1x256xi1> to vector<1x1x256xi1>
    %30 = vector.broadcast %29 : vector<1x1x256xi1> to vector<2x4x256xi1>
    %31 = arith.select %30, %26, %28 : vector<2x4x256xi1>, vector<2x4x256xf32>
    %c16_i32_7 = arith.constant 16 : i32
    %32 = tpu.dynamic_rotate %0 by %c16_i32_7 dim 2 : vector<2x4x256xf32>, i32 -> vector<2x4x256xf32>
    %cst_8 = arith.constant 0.000000e+00 : f32
    %33 = vector.broadcast %cst_8 : f32 to vector<2x4x256xf32>
    %34 = vector.shape_cast %23 : vector<1x1x256xi1> to vector<1x1x256xi1>
    %35 = vector.broadcast %34 : vector<1x1x256xi1> to vector<2x4x256xi1>
    %36 = arith.select %35, %32, %33 : vector<2x4x256xi1>, vector<2x4x256xf32>
    %c15_i32_9 = arith.constant 15 : i32
    %37 = tpu.dynamic_rotate %0 by %c15_i32_9 dim 2 : vector<2x4x256xf32>, i32 -> vector<2x4x256xf32>
    %38 = arith.andi %23, %21 : vector<1x1x256xi1>
    %cst_10 = arith.constant 0.000000e+00 : f32
    %39 = vector.broadcast %cst_10 : f32 to vector<2x4x256xf32>
    %40 = vector.shape_cast %38 : vector<1x1x256xi1> to vector<1x1x256xi1>
    %41 = vector.broadcast %40 : vector<1x1x256xi1> to vector<2x4x256xi1>
    %42 = arith.select %41, %37, %39 : vector<2x4x256xi1>, vector<2x4x256xf32>
    %c1_i32_11 = arith.constant 1 : i32
    %43 = tpu.dynamic_rotate %0 by %c1_i32_11 dim 2 : vector<2x4x256xf32>, i32 -> vector<2x4x256xf32>
    %cst_12 = arith.constant 0.000000e+00 : f32
    %44 = vector.broadcast %cst_12 : f32 to vector<2x4x256xf32>
    %45 = vector.shape_cast %19 : vector<1x1x256xi1> to vector<1x1x256xi1>
    %46 = vector.broadcast %45 : vector<1x1x256xi1> to vector<2x4x256xi1>
    %47 = arith.select %46, %43, %44 : vector<2x4x256xi1>, vector<2x4x256xf32>
    %c255_i32 = arith.constant 255 : i32
    %48 = tpu.dynamic_rotate %0 by %c255_i32 dim 2 : vector<2x4x256xf32>, i32 -> vector<2x4x256xf32>
    %cst_13 = arith.constant 0.000000e+00 : f32
    %49 = vector.broadcast %cst_13 : f32 to vector<2x4x256xf32>
    %50 = vector.shape_cast %21 : vector<1x1x256xi1> to vector<1x1x256xi1>
    %51 = vector.broadcast %50 : vector<1x1x256xi1> to vector<2x4x256xi1>
    %52 = arith.select %51, %48, %49 : vector<2x4x256xi1>, vector<2x4x256xf32>
    %c241_i32 = arith.constant 241 : i32
    %53 = tpu.dynamic_rotate %0 by %c241_i32 dim 2 : vector<2x4x256xf32>, i32 -> vector<2x4x256xf32>
    %54 = arith.andi %25, %19 : vector<1x1x256xi1>
    %cst_14 = arith.constant 0.000000e+00 : f32
    %55 = vector.broadcast %cst_14 : f32 to vector<2x4x256xf32>
    %56 = vector.shape_cast %54 : vector<1x1x256xi1> to vector<1x1x256xi1>
    %57 = vector.broadcast %56 : vector<1x1x256xi1> to vector<2x4x256xi1>
    %58 = arith.select %57, %53, %55 : vector<2x4x256xi1>, vector<2x4x256xf32>
    %c240_i32_15 = arith.constant 240 : i32
    %59 = tpu.dynamic_rotate %0 by %c240_i32_15 dim 2 : vector<2x4x256xf32>, i32 -> vector<2x4x256xf32>
    %cst_16 = arith.constant 0.000000e+00 : f32
    %60 = vector.broadcast %cst_16 : f32 to vector<2x4x256xf32>
    %61 = vector.shape_cast %25 : vector<1x1x256xi1> to vector<1x1x256xi1>
    %62 = vector.broadcast %61 : vector<1x1x256xi1> to vector<2x4x256xi1>
    %63 = arith.select %62, %59, %60 : vector<2x4x256xi1>, vector<2x4x256xf32>
    %c239_i32 = arith.constant 239 : i32
    %64 = tpu.dynamic_rotate %0 by %c239_i32 dim 2 : vector<2x4x256xf32>, i32 -> vector<2x4x256xf32>
    %65 = arith.andi %25, %21 : vector<1x1x256xi1>
    %cst_17 = arith.constant 0.000000e+00 : f32
    %66 = vector.broadcast %cst_17 : f32 to vector<2x4x256xf32>
    %67 = vector.shape_cast %65 : vector<1x1x256xi1> to vector<1x1x256xi1>
    %68 = vector.broadcast %67 : vector<1x1x256xi1> to vector<2x4x256xi1>
    %69 = arith.select %68, %64, %66 : vector<2x4x256xi1>, vector<2x4x256xf32>
    %c0_18 = arith.constant 0 : index
    %c0_19 = arith.constant 0 : index
    %70 = vector.load %arg3[%c0_18, %c0_19] : memref<4x1xf32, #tpu.memory_space<vmem>>, vector<4x1xf32>
    %cst_20 = arith.constant 0.000000e+00 : f32
    %71 = vector.broadcast %cst_20 : f32 to vector<4x256xf32>
    %c0_21 = arith.constant 0 : index
    %c0_22 = arith.constant 0 : index
    %c0_23 = arith.constant 0 : index
    %72 = vector.load %arg2[%c0_21, %c0_22, %c0_23] : memref<9x4x4xf32, #tpu.memory_space<vmem>>, vector<1x4x4xf32>
    %73 = vector.shape_cast %72 : vector<1x4x4xf32> to vector<4x4xf32>
    %74 = vector.extract_strided_slice %31 {offsets = [0, 0, 0], sizes = [1, 4, 256], strides = [1, 1, 1]} : vector<2x4x256xf32> to vector<1x4x256xf32>
    %75 = vector.shape_cast %74 : vector<1x4x256xf32> to vector<4x256xf32>
    %cst_24 = arith.constant dense<0.000000e+00> : vector<4x256xf32>
    %76 = tpu.matmul %73, %75, %cst_24 {dimension_numbers = #tpu.dot_dimension_numbers<[1], [0], [0], [1], [0, 0, 1, 1], [], []>} : vector<4x4xf32>, vector<4x256xf32>, vector<4x256xf32> -> vector<4x256xf32>
    %77 = arith.addf %71, %76 : vector<4x256xf32>
    %c1 = arith.constant 1 : index
    %c0_25 = arith.constant 0 : index
    %c0_26 = arith.constant 0 : index
    %78 = vector.load %arg2[%c1, %c0_25, %c0_26] : memref<9x4x4xf32, #tpu.memory_space<vmem>>, vector<1x4x4xf32>
    %79 = vector.shape_cast %78 : vector<1x4x4xf32> to vector<4x4xf32>
    %80 = vector.extract_strided_slice %36 {offsets = [0, 0, 0], sizes = [1, 4, 256], strides = [1, 1, 1]} : vector<2x4x256xf32> to vector<1x4x256xf32>
    %81 = vector.shape_cast %80 : vector<1x4x256xf32> to vector<4x256xf32>
    %cst_27 = arith.constant dense<0.000000e+00> : vector<4x256xf32>
    %82 = tpu.matmul %79, %81, %cst_27 {dimension_numbers = #tpu.dot_dimension_numbers<[1], [0], [0], [1], [0, 0, 1, 1], [], []>} : vector<4x4xf32>, vector<4x256xf32>, vector<4x256xf32> -> vector<4x256xf32>
    %83 = arith.addf %77, %82 : vector<4x256xf32>
    %c2 = arith.constant 2 : index
    %c0_28 = arith.constant 0 : index
    %c0_29 = arith.constant 0 : index
    %84 = vector.load %arg2[%c2, %c0_28, %c0_29] : memref<9x4x4xf32, #tpu.memory_space<vmem>>, vector<1x4x4xf32>
    %85 = vector.shape_cast %84 : vector<1x4x4xf32> to vector<4x4xf32>
    %86 = vector.extract_strided_slice %42 {offsets = [0, 0, 0], sizes = [1, 4, 256], strides = [1, 1, 1]} : vector<2x4x256xf32> to vector<1x4x256xf32>
    %87 = vector.shape_cast %86 : vector<1x4x256xf32> to vector<4x256xf32>
    %cst_30 = arith.constant dense<0.000000e+00> : vector<4x256xf32>
    %88 = tpu.matmul %85, %87, %cst_30 {dimension_numbers = #tpu.dot_dimension_numbers<[1], [0], [0], [1], [0, 0, 1, 1], [], []>} : vector<4x4xf32>, vector<4x256xf32>, vector<4x256xf32> -> vector<4x256xf32>
    %89 = arith.addf %83, %88 : vector<4x256xf32>
    %c3 = arith.constant 3 : index
    %c0_31 = arith.constant 0 : index
    %c0_32 = arith.constant 0 : index
    %90 = vector.load %arg2[%c3, %c0_31, %c0_32] : memref<9x4x4xf32, #tpu.memory_space<vmem>>, vector<1x4x4xf32>
    %91 = vector.shape_cast %90 : vector<1x4x4xf32> to vector<4x4xf32>
    %92 = vector.extract_strided_slice %47 {offsets = [0, 0, 0], sizes = [1, 4, 256], strides = [1, 1, 1]} : vector<2x4x256xf32> to vector<1x4x256xf32>
    %93 = vector.shape_cast %92 : vector<1x4x256xf32> to vector<4x256xf32>
    %cst_33 = arith.constant dense<0.000000e+00> : vector<4x256xf32>
    %94 = tpu.matmul %91, %93, %cst_33 {dimension_numbers = #tpu.dot_dimension_numbers<[1], [0], [0], [1], [0, 0, 1, 1], [], []>} : vector<4x4xf32>, vector<4x256xf32>, vector<4x256xf32> -> vector<4x256xf32>
    %95 = arith.addf %89, %94 : vector<4x256xf32>
    %c4 = arith.constant 4 : index
    %c0_34 = arith.constant 0 : index
    %c0_35 = arith.constant 0 : index
    %96 = vector.load %arg2[%c4, %c0_34, %c0_35] : memref<9x4x4xf32, #tpu.memory_space<vmem>>, vector<1x4x4xf32>
    %97 = vector.shape_cast %96 : vector<1x4x4xf32> to vector<4x4xf32>
    %98 = vector.extract_strided_slice %0 {offsets = [0, 0, 0], sizes = [1, 4, 256], strides = [1, 1, 1]} : vector<2x4x256xf32> to vector<1x4x256xf32>
    %99 = vector.shape_cast %98 : vector<1x4x256xf32> to vector<4x256xf32>
    %cst_36 = arith.constant dense<0.000000e+00> : vector<4x256xf32>
    %100 = tpu.matmul %97, %99, %cst_36 {dimension_numbers = #tpu.dot_dimension_numbers<[1], [0], [0], [1], [0, 0, 1, 1], [], []>} : vector<4x4xf32>, vector<4x256xf32>, vector<4x256xf32> -> vector<4x256xf32>
    %101 = arith.addf %95, %100 : vector<4x256xf32>
    %c5 = arith.constant 5 : index
    %c0_37 = arith.constant 0 : index
    %c0_38 = arith.constant 0 : index
    %102 = vector.load %arg2[%c5, %c0_37, %c0_38] : memref<9x4x4xf32, #tpu.memory_space<vmem>>, vector<1x4x4xf32>
    %103 = vector.shape_cast %102 : vector<1x4x4xf32> to vector<4x4xf32>
    %104 = vector.extract_strided_slice %52 {offsets = [0, 0, 0], sizes = [1, 4, 256], strides = [1, 1, 1]} : vector<2x4x256xf32> to vector<1x4x256xf32>
    %105 = vector.shape_cast %104 : vector<1x4x256xf32> to vector<4x256xf32>
    %cst_39 = arith.constant dense<0.000000e+00> : vector<4x256xf32>
    %106 = tpu.matmul %103, %105, %cst_39 {dimension_numbers = #tpu.dot_dimension_numbers<[1], [0], [0], [1], [0, 0, 1, 1], [], []>} : vector<4x4xf32>, vector<4x256xf32>, vector<4x256xf32> -> vector<4x256xf32>
    %107 = arith.addf %101, %106 : vector<4x256xf32>
    %c6 = arith.constant 6 : index
    %c0_40 = arith.constant 0 : index
    %c0_41 = arith.constant 0 : index
    %108 = vector.load %arg2[%c6, %c0_40, %c0_41] : memref<9x4x4xf32, #tpu.memory_space<vmem>>, vector<1x4x4xf32>
    %109 = vector.shape_cast %108 : vector<1x4x4xf32> to vector<4x4xf32>
    %110 = vector.extract_strided_slice %58 {offsets = [0, 0, 0], sizes = [1, 4, 256], strides = [1, 1, 1]} : vector<2x4x256xf32> to vector<1x4x256xf32>
    %111 = vector.shape_cast %110 : vector<1x4x256xf32> to vector<4x256xf32>
    %cst_42 = arith.constant dense<0.000000e+00> : vector<4x256xf32>
    %112 = tpu.matmul %109, %111, %cst_42 {dimension_numbers = #tpu.dot_dimension_numbers<[1], [0], [0], [1], [0, 0, 1, 1], [], []>} : vector<4x4xf32>, vector<4x256xf32>, vector<4x256xf32> -> vector<4x256xf32>
    %113 = arith.addf %107, %112 : vector<4x256xf32>
    %c7 = arith.constant 7 : index
    %c0_43 = arith.constant 0 : index
    %c0_44 = arith.constant 0 : index
    %114 = vector.load %arg2[%c7, %c0_43, %c0_44] : memref<9x4x4xf32, #tpu.memory_space<vmem>>, vector<1x4x4xf32>
    %115 = vector.shape_cast %114 : vector<1x4x4xf32> to vector<4x4xf32>
    %116 = vector.extract_strided_slice %63 {offsets = [0, 0, 0], sizes = [1, 4, 256], strides = [1, 1, 1]} : vector<2x4x256xf32> to vector<1x4x256xf32>
    %117 = vector.shape_cast %116 : vector<1x4x256xf32> to vector<4x256xf32>
    %cst_45 = arith.constant dense<0.000000e+00> : vector<4x256xf32>
    %118 = tpu.matmul %115, %117, %cst_45 {dimension_numbers = #tpu.dot_dimension_numbers<[1], [0], [0], [1], [0, 0, 1, 1], [], []>} : vector<4x4xf32>, vector<4x256xf32>, vector<4x256xf32> -> vector<4x256xf32>
    %119 = arith.addf %113, %118 : vector<4x256xf32>
    %c8 = arith.constant 8 : index
    %c0_46 = arith.constant 0 : index
    %c0_47 = arith.constant 0 : index
    %120 = vector.load %arg2[%c8, %c0_46, %c0_47] : memref<9x4x4xf32, #tpu.memory_space<vmem>>, vector<1x4x4xf32>
    %121 = vector.shape_cast %120 : vector<1x4x4xf32> to vector<4x4xf32>
    %122 = vector.extract_strided_slice %69 {offsets = [0, 0, 0], sizes = [1, 4, 256], strides = [1, 1, 1]} : vector<2x4x256xf32> to vector<1x4x256xf32>
    %123 = vector.shape_cast %122 : vector<1x4x256xf32> to vector<4x256xf32>
    %cst_48 = arith.constant dense<0.000000e+00> : vector<4x256xf32>
    %124 = tpu.matmul %121, %123, %cst_48 {dimension_numbers = #tpu.dot_dimension_numbers<[1], [0], [0], [1], [0, 0, 1, 1], [], []>} : vector<4x4xf32>, vector<4x256xf32>, vector<4x256xf32> -> vector<4x256xf32>
    %125 = arith.addf %119, %124 : vector<4x256xf32>
    %126 = vector.broadcast %70 : vector<4x1xf32> to vector<4x256xf32>
    %127 = arith.addf %125, %126 : vector<4x256xf32>
    %cst_49 = arith.constant 0.000000e+00 : f32
    %128 = vector.broadcast %cst_49 : f32 to vector<4x256xf32>
    %129 = arith.cmpf ogt, %127, %128 : vector<4x256xf32>
    %cst_50 = arith.constant 5.000000e-02 : f32
    %130 = vector.broadcast %cst_50 : f32 to vector<4x256xf32>
    %131 = arith.mulf %130, %127 : vector<4x256xf32>
    %132 = arith.select %129, %127, %131 : vector<4x256xi1>, vector<4x256xf32>
    %133 = vector.extract_strided_slice %0 {offsets = [0, 0, 0], sizes = [1, 4, 256], strides = [1, 1, 1]} : vector<2x4x256xf32> to vector<1x4x256xf32>
    %134 = vector.shape_cast %133 : vector<1x4x256xf32> to vector<4x256xf32>
    %135 = arith.subf %134, %132 : vector<4x256xf32>
    %c0_51 = arith.constant 0 : index
    %c0_52 = arith.constant 0 : index
    %c0_53 = arith.constant 0 : index
    %136 = vector.load %arg5[%c0_51, %c0_52, %c0_53] : memref<2x4x256xf32, #tpu.memory_space<vmem>>, vector<1x4x256xf32>
    %137 = vector.shape_cast %136 : vector<1x4x256xf32> to vector<4x256xf32>
    %138 = vector.shape_cast %132 : vector<4x256xf32> to vector<1x4x256xf32>
    tpu.vector_store %arg5[%c0_51, %c0_52, %c0_53], %138 {strides = array<i32>} : memref<2x4x256xf32, #tpu.memory_space<vmem>>, vector<1x4x256xf32>,
    %c0_54 = arith.constant 0 : index
    %c0_55 = arith.constant 0 : index
    %c0_56 = arith.constant 0 : index
    %139 = vector.load %arg4[%c0_54, %c0_55, %c0_56] : memref<2x4x256xf32, #tpu.memory_space<vmem>>, vector<1x4x256xf32>
    %140 = vector.shape_cast %139 : vector<1x4x256xf32> to vector<4x256xf32>
    %141 = vector.shape_cast %135 : vector<4x256xf32> to vector<1x4x256xf32>
    tpu.vector_store %arg4[%c0_54, %c0_55, %c0_56], %141 {strides = array<i32>} : memref<2x4x256xf32, #tpu.memory_space<vmem>>, vector<1x4x256xf32>,
    %cst_57 = arith.constant 0.000000e+00 : f32
    %142 = vector.broadcast %cst_57 : f32 to vector<4x256xf32>
    %c0_58 = arith.constant 0 : index
    %c0_59 = arith.constant 0 : index
    %c0_60 = arith.constant 0 : index
    %143 = vector.load %arg2[%c0_58, %c0_59, %c0_60] : memref<9x4x4xf32, #tpu.memory_space<vmem>>, vector<1x4x4xf32>
    %144 = vector.shape_cast %143 : vector<1x4x4xf32> to vector<4x4xf32>
    %145 = vector.extract_strided_slice %31 {offsets = [1, 0, 0], sizes = [1, 4, 256], strides = [1, 1, 1]} : vector<2x4x256xf32> to vector<1x4x256xf32>
    %146 = vector.shape_cast %145 : vector<1x4x256xf32> to vector<4x256xf32>
    %cst_61 = arith.constant dense<0.000000e+00> : vector<4x256xf32>
    %147 = tpu.matmul %144, %146, %cst_61 {dimension_numbers = #tpu.dot_dimension_numbers<[1], [0], [0], [1], [0, 0, 1, 1], [], []>} : vector<4x4xf32>, vector<4x256xf32>, vector<4x256xf32> -> vector<4x256xf32>
    %148 = arith.addf %142, %147 : vector<4x256xf32>
    %c1_62 = arith.constant 1 : index
    %c0_63 = arith.constant 0 : index
    %c0_64 = arith.constant 0 : index
    %149 = vector.load %arg2[%c1_62, %c0_63, %c0_64] : memref<9x4x4xf32, #tpu.memory_space<vmem>>, vector<1x4x4xf32>
    %150 = vector.shape_cast %149 : vector<1x4x4xf32> to vector<4x4xf32>
    %151 = vector.extract_strided_slice %36 {offsets = [1, 0, 0], sizes = [1, 4, 256], strides = [1, 1, 1]} : vector<2x4x256xf32> to vector<1x4x256xf32>
    %152 = vector.shape_cast %151 : vector<1x4x256xf32> to vector<4x256xf32>
    %cst_65 = arith.constant dense<0.000000e+00> : vector<4x256xf32>
    %153 = tpu.matmul %150, %152, %cst_65 {dimension_numbers = #tpu.dot_dimension_numbers<[1], [0], [0], [1], [0, 0, 1, 1], [], []>} : vector<4x4xf32>, vector<4x256xf32>, vector<4x256xf32> -> vector<4x256xf32>
    %154 = arith.addf %148, %153 : vector<4x256xf32>
    %c2_66 = arith.constant 2 : index
    %c0_67 = arith.constant 0 : index
    %c0_68 = arith.constant 0 : index
    %155 = vector.load %arg2[%c2_66, %c0_67, %c0_68] : memref<9x4x4xf32, #tpu.memory_space<vmem>>, vector<1x4x4xf32>
    %156 = vector.shape_cast %155 : vector<1x4x4xf32> to vector<4x4xf32>
    %157 = vector.extract_strided_slice %42 {offsets = [1, 0, 0], sizes = [1, 4, 256], strides = [1, 1, 1]} : vector<2x4x256xf32> to vector<1x4x256xf32>
    %158 = vector.shape_cast %157 : vector<1x4x256xf32> to vector<4x256xf32>
    %cst_69 = arith.constant dense<0.000000e+00> : vector<4x256xf32>
    %159 = tpu.matmul %156, %158, %cst_69 {dimension_numbers = #tpu.dot_dimension_numbers<[1], [0], [0], [1], [0, 0, 1, 1], [], []>} : vector<4x4xf32>, vector<4x256xf32>, vector<4x256xf32> -> vector<4x256xf32>
    %160 = arith.addf %154, %159 : vector<4x256xf32>
    %c3_70 = arith.constant 3 : index
    %c0_71 = arith.constant 0 : index
    %c0_72 = arith.constant 0 : index
    %161 = vector.load %arg2[%c3_70, %c0_71, %c0_72] : memref<9x4x4xf32, #tpu.memory_space<vmem>>, vector<1x4x4xf32>
    %162 = vector.shape_cast %161 : vector<1x4x4xf32> to vector<4x4xf32>
    %163 = vector.extract_strided_slice %47 {offsets = [1, 0, 0], sizes = [1, 4, 256], strides = [1, 1, 1]} : vector<2x4x256xf32> to vector<1x4x256xf32>
    %164 = vector.shape_cast %163 : vector<1x4x256xf32> to vector<4x256xf32>
    %cst_73 = arith.constant dense<0.000000e+00> : vector<4x256xf32>
    %165 = tpu.matmul %162, %164, %cst_73 {dimension_numbers = #tpu.dot_dimension_numbers<[1], [0], [0], [1], [0, 0, 1, 1], [], []>} : vector<4x4xf32>, vector<4x256xf32>, vector<4x256xf32> -> vector<4x256xf32>
    %166 = arith.addf %160, %165 : vector<4x256xf32>
    %c4_74 = arith.constant 4 : index
    %c0_75 = arith.constant 0 : index
    %c0_76 = arith.constant 0 : index
    %167 = vector.load %arg2[%c4_74, %c0_75, %c0_76] : memref<9x4x4xf32, #tpu.memory_space<vmem>>, vector<1x4x4xf32>
    %168 = vector.shape_cast %167 : vector<1x4x4xf32> to vector<4x4xf32>
    %169 = vector.extract_strided_slice %0 {offsets = [1, 0, 0], sizes = [1, 4, 256], strides = [1, 1, 1]} : vector<2x4x256xf32> to vector<1x4x256xf32>
    %170 = vector.shape_cast %169 : vector<1x4x256xf32> to vector<4x256xf32>
    %cst_77 = arith.constant dense<0.000000e+00> : vector<4x256xf32>
    %171 = tpu.matmul %168, %170, %cst_77 {dimension_numbers = #tpu.dot_dimension_numbers<[1], [0], [0], [1], [0, 0, 1, 1], [], []>} : vector<4x4xf32>, vector<4x256xf32>, vector<4x256xf32> -> vector<4x256xf32>
    %172 = arith.addf %166, %171 : vector<4x256xf32>
    %c5_78 = arith.constant 5 : index
    %c0_79 = arith.constant 0 : index
    %c0_80 = arith.constant 0 : index
    %173 = vector.load %arg2[%c5_78, %c0_79, %c0_80] : memref<9x4x4xf32, #tpu.memory_space<vmem>>, vector<1x4x4xf32>
    %174 = vector.shape_cast %173 : vector<1x4x4xf32> to vector<4x4xf32>
    %175 = vector.extract_strided_slice %52 {offsets = [1, 0, 0], sizes = [1, 4, 256], strides = [1, 1, 1]} : vector<2x4x256xf32> to vector<1x4x256xf32>
    %176 = vector.shape_cast %175 : vector<1x4x256xf32> to vector<4x256xf32>
    %cst_81 = arith.constant dense<0.000000e+00> : vector<4x256xf32>
    %177 = tpu.matmul %174, %176, %cst_81 {dimension_numbers = #tpu.dot_dimension_numbers<[1], [0], [0], [1], [0, 0, 1, 1], [], []>} : vector<4x4xf32>, vector<4x256xf32>, vector<4x256xf32> -> vector<4x256xf32>
    %178 = arith.addf %172, %177 : vector<4x256xf32>
    %c6_82 = arith.constant 6 : index
    %c0_83 = arith.constant 0 : index
    %c0_84 = arith.constant 0 : index
    %179 = vector.load %arg2[%c6_82, %c0_83, %c0_84] : memref<9x4x4xf32, #tpu.memory_space<vmem>>, vector<1x4x4xf32>
    %180 = vector.shape_cast %179 : vector<1x4x4xf32> to vector<4x4xf32>
    %181 = vector.extract_strided_slice %58 {offsets = [1, 0, 0], sizes = [1, 4, 256], strides = [1, 1, 1]} : vector<2x4x256xf32> to vector<1x4x256xf32>
    %182 = vector.shape_cast %181 : vector<1x4x256xf32> to vector<4x256xf32>
    %cst_85 = arith.constant dense<0.000000e+00> : vector<4x256xf32>
    %183 = tpu.matmul %180, %182, %cst_85 {dimension_numbers = #tpu.dot_dimension_numbers<[1], [0], [0], [1], [0, 0, 1, 1], [], []>} : vector<4x4xf32>, vector<4x256xf32>, vector<4x256xf32> -> vector<4x256xf32>
    %184 = arith.addf %178, %183 : vector<4x256xf32>
    %c7_86 = arith.constant 7 : index
    %c0_87 = arith.constant 0 : index
    %c0_88 = arith.constant 0 : index
    %185 = vector.load %arg2[%c7_86, %c0_87, %c0_88] : memref<9x4x4xf32, #tpu.memory_space<vmem>>, vector<1x4x4xf32>
    %186 = vector.shape_cast %185 : vector<1x4x4xf32> to vector<4x4xf32>
    %187 = vector.extract_strided_slice %63 {offsets = [1, 0, 0], sizes = [1, 4, 256], strides = [1, 1, 1]} : vector<2x4x256xf32> to vector<1x4x256xf32>
    %188 = vector.shape_cast %187 : vector<1x4x256xf32> to vector<4x256xf32>
    %cst_89 = arith.constant dense<0.000000e+00> : vector<4x256xf32>
    %189 = tpu.matmul %186, %188, %cst_89 {dimension_numbers = #tpu.dot_dimension_numbers<[1], [0], [0], [1], [0, 0, 1, 1], [], []>} : vector<4x4xf32>, vector<4x256xf32>, vector<4x256xf32> -> vector<4x256xf32>
    %190 = arith.addf %184, %189 : vector<4x256xf32>
    %c8_90 = arith.constant 8 : index
    %c0_91 = arith.constant 0 : index
    %c0_92 = arith.constant 0 : index
    %191 = vector.load %arg2[%c8_90, %c0_91, %c0_92] : memref<9x4x4xf32, #tpu.memory_space<vmem>>, vector<1x4x4xf32>
    %192 = vector.shape_cast %191 : vector<1x4x4xf32> to vector<4x4xf32>
    %193 = vector.extract_strided_slice %69 {offsets = [1, 0, 0], sizes = [1, 4, 256], strides = [1, 1, 1]} : vector<2x4x256xf32> to vector<1x4x256xf32>
    %194 = vector.shape_cast %193 : vector<1x4x256xf32> to vector<4x256xf32>
    %cst_93 = arith.constant dense<0.000000e+00> : vector<4x256xf32>
    %195 = tpu.matmul %192, %194, %cst_93 {dimension_numbers = #tpu.dot_dimension_numbers<[1], [0], [0], [1], [0, 0, 1, 1], [], []>} : vector<4x4xf32>, vector<4x256xf32>, vector<4x256xf32> -> vector<4x256xf32>
    %196 = arith.addf %190, %195 : vector<4x256xf32>
    %197 = vector.broadcast %70 : vector<4x1xf32> to vector<4x256xf32>
    %198 = arith.addf %196, %197 : vector<4x256xf32>
    %cst_94 = arith.constant 0.000000e+00 : f32
    %199 = vector.broadcast %cst_94 : f32 to vector<4x256xf32>
    %200 = arith.cmpf ogt, %198, %199 : vector<4x256xf32>
    %cst_95 = arith.constant 5.000000e-02 : f32
    %201 = vector.broadcast %cst_95 : f32 to vector<4x256xf32>
    %202 = arith.mulf %201, %198 : vector<4x256xf32>
    %203 = arith.select %200, %198, %202 : vector<4x256xi1>, vector<4x256xf32>
    %204 = vector.extract_strided_slice %0 {offsets = [1, 0, 0], sizes = [1, 4, 256], strides = [1, 1, 1]} : vector<2x4x256xf32> to vector<1x4x256xf32>
    %205 = vector.shape_cast %204 : vector<1x4x256xf32> to vector<4x256xf32>
    %206 = arith.subf %205, %203 : vector<4x256xf32>
    %c1_96 = arith.constant 1 : index
    %c0_97 = arith.constant 0 : index
    %c0_98 = arith.constant 0 : index
    %207 = vector.load %arg5[%c1_96, %c0_97, %c0_98] : memref<2x4x256xf32, #tpu.memory_space<vmem>>, vector<1x4x256xf32>
    %208 = vector.shape_cast %207 : vector<1x4x256xf32> to vector<4x256xf32>
    %209 = vector.shape_cast %203 : vector<4x256xf32> to vector<1x4x256xf32>
    tpu.vector_store %arg5[%c1_96, %c0_97, %c0_98], %209 {strides = array<i32>} : memref<2x4x256xf32, #tpu.memory_space<vmem>>, vector<1x4x256xf32>,
    %c1_99 = arith.constant 1 : index
    %c0_100 = arith.constant 0 : index
    %c0_101 = arith.constant 0 : index
    %210 = vector.load %arg4[%c1_99, %c0_100, %c0_101] : memref<2x4x256xf32, #tpu.memory_space<vmem>>, vector<1x4x256xf32>
    %211 = vector.shape_cast %210 : vector<1x4x256xf32> to vector<4x256xf32>
    %212 = vector.shape_cast %206 : vector<4x256xf32> to vector<1x4x256xf32>
    tpu.vector_store %arg4[%c1_99, %c0_100, %c0_101], %212 {strides = array<i32>} : memref<2x4x256xf32, #tpu.memory_space<vmem>>, vector<1x4x256xf32>,
    return
  }
  func.func @transform_0(%arg0: i32) -> (i32, i32, i32) {
    %c0_i32 = arith.constant 0 : i32
    %c0_i32_0 = arith.constant 0 : i32
    %c0_i32_1 = arith.constant 0 : i32
    return %arg0, %c0_i32, %c0_i32_0 : i32, i32, i32
  }
  func.func @transform_1(%arg0: i32) -> (i32, i32, i32) {
    %c0_i32 = arith.constant 0 : i32
    %c0_i32_0 = arith.constant 0 : i32
    %c0_i32_1 = arith.constant 0 : i32
    %c0_i32_2 = arith.constant 0 : i32
    return %c0_i32, %c0_i32_0, %c0_i32_1 : i32, i32, i32
  }
  func.func @transform_2(%arg0: i32) -> (i32, i32) {
    %c0_i32 = arith.constant 0 : i32
    %c0_i32_0 = arith.constant 0 : i32
    %c0_i32_1 = arith.constant 0 : i32
    return %c0_i32, %c0_i32_0 : i32, i32
  }
  func.func @transform_3(%arg0: i32) -> (i32, i32, i32) {
    %c0_i32 = arith.constant 0 : i32
    %c0_i32_0 = arith.constant 0 : i32
    %c0_i32_1 = arith.constant 0 : i32
    return %arg0, %c0_i32, %c0_i32_0 : i32, i32, i32
  }
  func.func @transform_4(%arg0: i32) -> (i32, i32, i32) {
    %c0_i32 = arith.constant 0 : i32
    %c0_i32_0 = arith.constant 0 : i32
    %c0_i32_1 = arith.constant 0 : i32
    return %arg0, %c0_i32, %c0_i32_0 : i32, i32, i32
  }
}

</mosaic_0001>

<bundles_post_ra>
// kernel: cca_layer.1
= control target key start
LH: loop header
LB: loop body
LE: loop exit
PB: predicated region body
PF: predicated region fallthrough
CT: control target
= control target key end

     0   :  { %v1890_v2 = vmov 0.0   ;;  %s1891_s19 = smov 16   ;;  %s1893_s20 = smov 15   ;;  %v1899_v5 = vmov 0   ;;  %v18_v7 = vlaneseq  ;;  %vm243_vm1 = vcmask 1043456   ;;  %s2259_s0 = inlined_call_operand.vmem [shape: f32[2,4,256], index: 0, kind: input, shape index: {}]   ;;  %s2260_s2 = inlined_call_operand.vmem [shape: f32[4,1], index: 2, kind: input, shape index: {}]   ;;  %s2261_s1 = inlined_call_operand.vmem [shape: f32[9,4,4], index: 1, kind: input, shape index: {}]   ;;  %s2262_s4 = inlined_call_operand.vmem [shape: f32[2,4,256], index: 4, kind: output, shape index: {1}]   ;;  %s2263_s3 = inlined_call_operand.vmem [shape: f32[2,4,256], index: 3, kind: output, shape index: {0}]  }
   0x1   :  { %v1928_v0 = vld [vmem:[%s2259_s0] sm:$0xff]  ;;  %v1933_v1 = vld [vmem:[%s2259_s0 + $0x8] sm:$0xff]  ;;  %314 = vmatprep.mubr.f32.mxu0 %v1890_v2  ;;  %1082 = vmatprep.mubr.f32.mxu1 %v1890_v2  ;;  %s1892_s0 = smov 17   ;;  %s1894_s21 = smov 1   ;;  %vm239_vm3 = vcmask 31744  }
   0x2   :  { %82 = vrot.lane.b32.xlu0 %v1928_v0, %s1891_s19  ;;  %v1940_v3 = vcombine.high %v1928_v0, %v1928_v0  ;;  %v1945_v4 = vcombine.high %v1933_v1, %v1933_v1  ;;  %s1895_s22 = smov 127   ;;  %s1896_s23 = smov 113   ;;  %v235_v6 = vld [vmem:[%s2260_s2] sm:$0xf]  ;;  %v1980_v8 = vand.u32 127, %v18_v7 }
   0x3   :  { %s1897_s24 = smov 112   ;;  %s1898_s25 = smov 111   ;;  %1887 = vset.pattern.permute.xlu0 %v1899_v5  ;;  %v1773_v13 = vld [vmem:[%s2261_s1 + $0x4] sm:$0xf]  ;;  %v236_v35 = vld [vmem:[%s2261_s1] sm:$0xf] }
   0x4   :  { %86 = vrot.lane.b32.xlu1 %v1940_v3, %s1891_s19  ;;  %vm90_vm0 = vcmp.lt.s32.totalorder %v1980_v8, 16  ;;  %vm49_vm2 = vcmp.ge.s32.totalorder %v1980_v8, 16  ;;  %v1992_v14 = vadd.s32 128, %v1980_v8  ;;  %v25_v17 = vand.u32 15, %v1980_v8  ;;  %v1808_v21 = vld [vmem:[%s2261_s1 + $0x4] sm:$0xf] }
   0x5   :  { %vm67_vm5 = vcmp.lt.s32.totalorder %v1980_v8, 17  ;;  %v1007_v41 = vld [vmem:[%s2261_s1] sm:$0xf]  ;;  %vm111_vm9 = vcmp.lt.s32.totalorder %v1980_v8, 15  ;;  %v1780_v52 = vld [vmem:[%s2261_s1 + $0x8] sm:$0xf] }
   0x6   :  { %84 = vrot.lane.b32.xlu0 %v1933_v1, %s1891_s19  ;;  %v32_v22 = vand.u32 15, %v1992_v14  ;;  %vm2012_vm4 = vcmp.ne.s32.totalorder %v25_v17, 0  ;;  %vm2048_vm8 = vcmp.ne.s32.totalorder %v25_v17, 15  ;;  %v1815_v58 = vld [vmem:[%s2261_s1 + $0x8] sm:$0xf]  ;;  %vm134_vm12 = vcmp.lt.s32.totalorder %v1980_v8, 1 }
   0x7   :  { %vm2027_vm7 = vmand %vm49_vm2, %vm2012_vm4  ;;  %v1784_v7 = vld [vmem:[%s2261_s1 + $0xc] sm:$0xf]  ;;  %vm155_vm13 = vcmp.lt.s32.totalorder %v1980_v8, 127  ;;  %vm52_vm14 = vcmp.lt.s32.totalorder %v1992_v14, 240  ;;  %vm176_vm15 = vcmp.lt.s32.totalorder %v1980_v8, 113 }
   0x8   :  { %88 = vrot.lane.b32.xlu1 %v1945_v4, %s1891_s19  ;;  %vm2019_vm6 = vcmp.ne.s32.totalorder %v32_v22, 0  ;;  %vm2058_vm10 = vcmp.ne.s32.totalorder %v32_v22, 15  ;;  %vm2066_vm11 = vmand %vm49_vm2, %vm2048_vm8  ;;  %v1792_v27 = vld [vmem:[%s2261_s1 + $0x14] sm:$0xf]  ;;  %v1800_v44 = vld [vmem:[%s2261_s1 + $0x1c] sm:$0xf] }
   0x9   :  { %v1839_v42 = vld [vmem:[%s2261_s1 + $0x20] sm:$0xf] }
   0xa   :  { %59 = vrot.lane.b32.xlu0 %v1928_v0, %s1892_s0 }
   0xc   :  { %61 = vrot.lane.b32.xlu1 %v1933_v1, %s1892_s0 }
   0xe   :  { %63 = vrot.lane.b32.xlu0 %v1940_v3, %s1892_s0 }
  0x10   :  { %65 = vrot.lane.b32.xlu1 %v1945_v4, %s1892_s0 }
  0x12   :  { %103 = vrot.lane.b32.xlu0 %v1928_v0, %s1893_s20 }
  0x14   :  { %105 = vrot.lane.b32.xlu1 %v1933_v1, %s1893_s20 }
  0x16   :  { %107 = vrot.lane.b32.xlu0 %v1940_v3, %s1893_s20 }
  0x18   :  { %109 = vrot.lane.b32.xlu1 %v1945_v4, %s1893_s20 }
  0x1a   :  { %126 = vrot.lane.b32.xlu0 %v1928_v0, %s1894_s21 }
  0x1c   :  { %128 = vrot.lane.b32.xlu1 %v1933_v1, %s1894_s21 }
  0x1e   :  { %130 = vrot.lane.b32.xlu0 %v1940_v3, %s1894_s21 }
  0x20   :  { %132 = vrot.lane.b32.xlu1 %v1945_v4, %s1894_s21 }
  0x22   :  { %147 = vrot.lane.b32.xlu0 %v1928_v0, %s1895_s22 }
  0x24   :  { %149 = vrot.lane.b32.xlu1 %v1933_v1, %s1895_s22 }
  0x26   :  { %151 = vrot.lane.b32.xlu0 %v1940_v3, %s1895_s22 }
  0x28   :  { %153 = vrot.lane.b32.xlu1 %v1945_v4, %s1895_s22 }
  0x2a   :  { %168 = vrot.lane.b32.xlu0 %v1928_v0, %s1896_s23 }
  0x2c   :  { %170 = vrot.lane.b32.xlu1 %v1933_v1, %s1896_s23 }
  0x2e   :  { %172 = vrot.lane.b32.xlu0 %v1940_v3, %s1896_s23 }
  0x30   :  { %174 = vrot.lane.b32.xlu1 %v1945_v4, %s1896_s23 }
  0x32   :  { %191 = vrot.lane.b32.xlu0 %v1928_v0, %s1897_s24 }
  0x34   :  { %193 = vrot.lane.b32.xlu1 %v1933_v1, %s1897_s24 }
  0x36   :  { %195 = vrot.lane.b32.xlu0 %v1940_v3, %s1897_s24 }
  0x38   :  { %197 = vrot.lane.b32.xlu1 %v1945_v4, %s1897_s24 }
  0x3a   :  { %212 = vrot.lane.b32.xlu0 %v1928_v0, %s1898_s25 }
  0x3c   :  { %214 = vrot.lane.b32.xlu1 %v1933_v1, %s1898_s25 }
  0x3e   :  { %216 = vrot.lane.b32.xlu0 %v1940_v3, %s1898_s25 }
  0x40   :  { %218 = vrot.lane.b32.xlu1 %v1945_v4, %s1898_s25 }
  0x42   :  { %989 = vperm.xlu0 %1887, %v235_v6  }
  0x74   :  { %v83_v9 = vpop.permute.xlu0 %82 }
  0x76   :  { %v87_v10 = vpop.permute.xlu1 %86 }
  0x77   :  { %v93_v11 = vsel %vm90_vm0, %v87_v10, %v83_v9  ;;  %v91_v12 = vsel %vm90_vm0, %v83_v9, %v87_v10 }
  0x78   :  { %v85_v15 = vpop.permute.xlu0 %84  ;;  %1774 = vmatprep.subr.msk.mxu0 %vm243_vm1, %v91_v12  ;;  %v99_v16 = vsel %vm49_vm2, %v93_v11, 0.0 }
  0x79   :  { %1775 = vmatpush1.msk.msra.mxu0 %vm243_vm1, %v99_v16 }
  0x7a   :  { %v89_v18 = vpop.permute.xlu1 %88  ;;  %1776 = vmatmul.mubr.msk.f32.vlgmr.msra.gmra.mrb[0].mxu0 %vm239_vm3, %v1773_v13  ;;  %v1819_v13 = vld [vmem:[%s2261_s1 + $0xc] sm:$0xf] }
  0x7b   :  { %v94_v19 = vsel %vm90_vm0, %v89_v18, %v85_v15  ;;  %v92_v20 = vsel %vm90_vm0, %v85_v15, %v89_v18  ;;  %394 = vmatprep.mubr.f32.mxu0 %v1890_v2  ;;  %vm2151_vm0 = vmand %vm52_vm14, %vm2019_vm6 }
  0x7c   :  { %v60_v23 = vpop.permute.xlu0 %59  ;;  %1809 = vmatprep.subr.msk.mxu1 %vm243_vm1, %v92_v20  ;;  %v101_v24 = vsel %vm49_vm2, %v94_v19, 0.0  ;;  %vm199_vm2 = vcmp.lt.s32.totalorder %v1980_v8, 112 }
  0x7d   :  { %1810 = vmatpush1.msk.msra.mxu1 %vm243_vm1, %v101_v24 }
  0x7e   :  { %v62_v26 = vpop.permute.xlu1 %61  ;;  %1811 = vmatmul.mubr.msk.f32.vlgmr.msra.gmra.mrb[0].mxu1 %vm239_vm3, %v1808_v21  ;;  %v1788_v21 = vld [vmem:[%s2261_s1 + $0x10] sm:$0xf] }
  0x7f   :  { %1162 = vmatprep.mubr.f32.mxu1 %v1890_v2 }
  0x80   :  { %v64_v29 = vpop.permute.xlu0 %63 }
  0x81   :  { %v68_v30 = vsel %vm67_vm5, %v60_v23, %v64_v29  ;;  %v70_v31 = vsel %vm67_vm5, %v64_v29, %v60_v23 }
  0x82   :  { %v78_v32 = vsel %vm2027_vm7, %v70_v31, 0.0  ;;  %v79_v33 = vsel %vm2019_vm6, %v68_v30, 0.0  ;;  %v66_v34 = vpop.permute.xlu1 %65 }
  0x83   :  { %v69_v36 = vsel %vm67_vm5, %v62_v26, %v66_v34  ;;  %v71_v37 = vsel %vm67_vm5, %v66_v34, %v62_v26  ;;  %1777 = vmatprep.subr.msk.mxu0 %vm243_vm1, %v79_v33  ;;  %v1823_v26 = vld [vmem:[%s2261_s1 + $0x10] sm:$0xf]  ;;  %vm2209_vm5 = vmand %vm52_vm14, %vm2058_vm10 }
  0x84   :  { %v80_v38 = vsel %vm2027_vm7, %v71_v37, 0.0  ;;  %v81_v39 = vsel %vm2019_vm6, %v69_v36, 0.0  ;;  %v104_v40 = vpop.permute.xlu0 %103  ;;  %1778 = vmatpush1.msk.msra.mxu0 %vm243_vm1, %v78_v32 }
  0x85   :  { %1779 = vmatmul.mubr.msk.f32.vlgmr.msra.gmra.mrb[0].mxu0 %vm239_vm3, %v236_v35  ;;  %1812 = vmatprep.subr.msk.mxu1 %vm243_vm1, %v81_v39 }
  0x86   :  { %1813 = vmatpush1.msk.msra.mxu1 %vm243_vm1, %v80_v38  ;;  %v106_v43 = vpop.permute.xlu1 %105  ;;  %476 = vmatprep.mubr.f32.mxu0 %v1890_v2 }
  0x87   :  { %1814 = vmatmul.mubr.msk.f32.vlgmr.msra.gmra.mrb[0].mxu1 %vm239_vm3, %v1007_v41  ;;  %v1827_v41 = vld [vmem:[%s2261_s1 + $0x14] sm:$0xf] }
  0x88   :  { %v108_v46 = vpop.permute.xlu0 %107  ;;  %1243 = vmatprep.mubr.f32.mxu1 %v1890_v2 }
  0x89   :  { %v112_v47 = vsel %vm111_vm9, %v104_v40, %v108_v46  ;;  %v114_v48 = vsel %vm111_vm9, %v108_v46, %v104_v40 }
  0x8a   :  { %v122_v49 = vsel %vm2066_vm11, %v114_v48, 0.0  ;;  %v123_v50 = vsel %vm2058_vm10, %v112_v47, 0.0  ;;  %v110_v51 = vpop.permute.xlu1 %109 }
  0x8b   :  { %v113_v53 = vsel %vm111_vm9, %v106_v43, %v110_v51  ;;  %v115_v54 = vsel %vm111_vm9, %v110_v51, %v106_v43  ;;  %1781 = vmatprep.subr.msk.mxu0 %vm243_vm1, %v123_v50  ;;  %v1796_v50 = vld [vmem:[%s2261_s1 + $0x18] sm:$0xf] }
  0x8c   :  { %v124_v55 = vsel %vm2066_vm11, %v115_v54, 0.0  ;;  %v125_v56 = vsel %vm2058_vm10, %v113_v53, 0.0  ;;  %v127_v57 = vpop.permute.xlu0 %126  ;;  %1782 = vmatpush1.msk.msra.mxu0 %vm243_vm1, %v122_v49  ;;  %v1831_v54 = vld [vmem:[%s2261_s1 + $0x18] sm:$0xf] }
  0x8d   :  { %1783 = vmatmul.mubr.msk.f32.vlgmr.msra.gmra.mrb[0].mxu0 %vm239_vm3, %v1780_v52  ;;  %1816 = vmatprep.subr.msk.mxu1 %vm243_vm1, %v125_v56 }
  0x8e   :  { %1817 = vmatpush1.msk.msra.mxu1 %vm243_vm1, %v124_v55  ;;  %v129_v59 = vpop.permute.xlu1 %128  ;;  %560 = vmatprep.mubr.f32.mxu0 %v1890_v2 }
  0x8f   :  { %1818 = vmatmul.mubr.msk.f32.vlgmr.msra.gmra.mrb[0].mxu1 %vm239_vm3, %v1815_v58 }
  0x90   :  { %v131_v60 = vpop.permute.xlu0 %130  ;;  %1326 = vmatprep.mubr.f32.mxu1 %v1890_v2 }
  0x91   :  { %v135_v61 = vsel %vm134_vm12, %v127_v57, %v131_v60  ;;  %v137_v62 = vsel %vm134_vm12, %v131_v60, %v127_v57 }
  0x92   :  { %v143_v63 = vsel %vm2012_vm4, %v137_v62, 0.0  ;;  %v144_v5 = vsel %vm2019_vm6, %v135_v61, 0.0  ;;  %v133_v6 = vpop.permute.xlu1 %132 }
  0x93   :  { %v136_v9 = vsel %vm134_vm12, %v129_v59, %v133_v6  ;;  %v138_v10 = vsel %vm134_vm12, %v133_v6, %v129_v59  ;;  %1785 = vmatprep.subr.msk.mxu0 %vm243_vm1, %v144_v5 }
  0x94   :  { %v145_v11 = vsel %vm2012_vm4, %v138_v10, 0.0  ;;  %v146_v12 = vsel %vm2019_vm6, %v136_v9, 0.0  ;;  %1786 = vmatpush1.msk.msra.mxu0 %vm243_vm1, %v143_v63  ;;  %v148_v15 = vpop.permute.xlu0 %147  ;;  %v1804_v10 = vld [vmem:[%s2261_s1 + $0x20] sm:$0xf] }
  0x95   :  { %1787 = vmatmul.mubr.msk.f32.vlgmr.msra.gmra.mrb[0].mxu0 %vm239_vm3, %v1784_v7  ;;  %1820 = vmatprep.subr.msk.mxu1 %vm243_vm1, %v146_v12  ;;  %v1835_v7 = vld [vmem:[%s2261_s1 + $0x1c] sm:$0xf] }
  0x96   :  { %1821 = vmatpush1.msk.msra.mxu1 %vm243_vm1, %v145_v11  ;;  %v150_v16 = vpop.permute.xlu1 %149  ;;  %1789 = vmatprep.subr.msk.mxu0 %vm243_vm1, %v1940_v3 }
  0x97   :  { %1822 = vmatmul.mubr.msk.f32.vlgmr.msra.gmra.mrb[0].mxu1 %vm239_vm3, %v1819_v13  ;;  %1790 = vmatpush1.msk.msra.mxu0 %vm243_vm1, %v1928_v0 }
  0x98   :  { %v152_v17 = vpop.permute.xlu0 %151  ;;  %642 = vmatprep.mubr.f32.mxu0 %v1890_v2  ;;  %1824 = vmatprep.subr.msk.mxu1 %vm243_vm1, %v1945_v4 }
  0x99   :  { %v156_v18 = vsel %vm155_vm13, %v148_v15, %v152_v17  ;;  %v158_v19 = vsel %vm155_vm13, %v152_v17, %v148_v15  ;;  %1825 = vmatpush1.msk.msra.mxu1 %vm243_vm1, %v1933_v1  ;;  %1407 = vmatprep.mubr.f32.mxu1 %v1890_v2 }
  0x9a   :  { %v165_v3 = vsel %vm2058_vm10, %v158_v19, 0.0  ;;  %v154_v20 = vpop.permute.xlu1 %153  ;;  %v164_v22 = vsel %vm2048_vm8, %v156_v18, 0.0 }
  0x9b   :  { %v157_v23 = vsel %vm155_vm13, %v150_v16, %v154_v20  ;;  %v159_v4 = vsel %vm155_vm13, %v154_v20, %v150_v16  ;;  %1793 = vmatprep.subr.msk.mxu0 %vm243_vm1, %v165_v3 }
  0x9c   :  { %v167_v24 = vsel %vm2058_vm10, %v159_v4, 0.0  ;;  %v169_v28 = vpop.permute.xlu0 %168  ;;  %v166_v29 = vsel %vm2048_vm8, %v157_v23, 0.0 }
  0x9d   :  { %1791 = vmatmul.mubr.msk.f32.vlgmr.msra.gmra.mrb[0].mxu0 %vm239_vm3, %v1788_v21  ;;  %1828 = vmatprep.subr.msk.mxu1 %vm243_vm1, %v167_v24 }
  0x9e   :  { %v171_v30 = vpop.permute.xlu1 %170  ;;  %1794 = vmatpush1.msk.msra.mxu0 %vm243_vm1, %v164_v22  ;;  %726 = vmatprep.mubr.f32.mxu0 %v1890_v2 }
  0x9f   :  { %1826 = vmatmul.mubr.msk.f32.vlgmr.msra.gmra.mrb[0].mxu1 %vm239_vm3, %v1823_v26 }
  0xa0   :  { %1829 = vmatpush1.msk.msra.mxu1 %vm243_vm1, %v166_v29  ;;  %v173_v32 = vpop.permute.xlu0 %172  ;;  %1490 = vmatprep.mubr.f32.mxu1 %v1890_v2 }
  0xa1   :  { %v177_v33 = vsel %vm176_vm15, %v169_v28, %v173_v32  ;;  %v179_v34 = vsel %vm176_vm15, %v173_v32, %v169_v28 }
  0xa2   :  { %v188_v35 = vsel %vm2151_vm0, %v179_v34, 0.0  ;;  %v175_v36 = vpop.permute.xlu1 %174  ;;  %v187_v37 = vsel %vm2012_vm4, %v177_v33, 0.0 }
  0xa3   :  { %v178_v38 = vsel %vm176_vm15, %v171_v30, %v175_v36  ;;  %v180_v39 = vsel %vm176_vm15, %v175_v36, %v171_v30  ;;  %1797 = vmatprep.subr.msk.mxu0 %vm243_vm1, %v188_v35 }
  0xa4   :  { %v190_v40 = vsel %vm2151_vm0, %v180_v39, 0.0  ;;  %v192_v43 = vpop.permute.xlu0 %191  ;;  %v189_v45 = vsel %vm2012_vm4, %v178_v38, 0.0  ;;  %vm220_vm4 = vcmp.lt.s32.totalorder %v1980_v8, 111 }
  0xa5   :  { %1795 = vmatmul.mubr.msk.f32.vlgmr.msra.gmra.mrb[0].mxu0 %vm239_vm3, %v1792_v27  ;;  %1832 = vmatprep.subr.msk.mxu1 %vm243_vm1, %v190_v40 }
  0xa6   :  { %v194_v46 = vpop.permute.xlu1 %193  ;;  %1798 = vmatpush1.msk.msra.mxu0 %vm243_vm1, %v187_v37  ;;  %810 = vmatprep.mubr.f32.mxu0 %v1890_v2 }
  0xa7   :  { %1830 = vmatmul.mubr.msk.f32.vlgmr.msra.gmra.mrb[0].mxu1 %vm239_vm3, %v1827_v41 }
  0xa8   :  { %1833 = vmatpush1.msk.msra.mxu1 %vm243_vm1, %v189_v45  ;;  %v196_v47 = vpop.permute.xlu0 %195  ;;  %1573 = vmatprep.mubr.f32.mxu1 %v1890_v2 }
  0xa9   :  { %v202_v25 = vsel %vm199_vm2, %v196_v47, %v192_v43  ;;  %v200_v51 = vsel %vm199_vm2, %v192_v43, %v196_v47 }
  0xaa   :  { %v209_v48 = vsel %vm52_vm14, %v202_v25, 0.0  ;;  %v198_v49 = vpop.permute.xlu1 %197 }
  0xab   :  { %v203_v52 = vsel %vm199_vm2, %v198_v49, %v194_v46  ;;  %1801 = vmatprep.subr.msk.mxu0 %vm243_vm1, %v209_v48  ;;  %v201_v56 = vsel %vm199_vm2, %v194_v46, %v198_v49 }
  0xac   :  { %v211_v53 = vsel %vm52_vm14, %v203_v52, 0.0  ;;  %v213_v55 = vpop.permute.xlu0 %212 }
  0xad   :  { %1799 = vmatmul.mubr.msk.f32.vlgmr.msra.gmra.mrb[0].mxu0 %vm239_vm3, %v1796_v50  ;;  %1836 = vmatprep.subr.msk.mxu1 %vm243_vm1, %v211_v53 }
  0xae   :  { %1802 = vmatpush1.msk.msra.mxu0 %vm243_vm1, %v200_v51  ;;  %v215_v57 = vpop.permute.xlu1 %214  ;;  %894 = vmatprep.mubr.f32.mxu0 %v1890_v2 }
  0xaf   :  { %1834 = vmatmul.mubr.msk.f32.vlgmr.msra.gmra.mrb[0].mxu1 %vm239_vm3, %v1831_v54 }
  0xb0   :  { %1837 = vmatpush1.msk.msra.mxu1 %vm243_vm1, %v201_v56  ;;  %v217_v59 = vpop.permute.xlu0 %216  ;;  %1656 = vmatprep.mubr.f32.mxu1 %v1890_v2 }
  0xb1   :  { %v221_v60 = vsel %vm220_vm4, %v213_v55, %v217_v59  ;;  %v223_v61 = vsel %vm220_vm4, %v217_v59, %v213_v55 }
  0xb2   :  { %v232_v8 = vsel %vm2209_vm5, %v223_v61, 0.0  ;;  %v219_v62 = vpop.permute.xlu1 %218  ;;  %v231_v14 = vsel %vm2048_vm8, %v221_v60, 0.0 }
  0xb3   :  { %v222_v63 = vsel %vm220_vm4, %v215_v57, %v219_v62  ;;  %v224_v5 = vsel %vm220_vm4, %v219_v62, %v215_v57  ;;  %1805 = vmatprep.subr.msk.mxu0 %vm243_vm1, %v232_v8 }
  0xb4   :  { %v234_v6 = vsel %vm2209_vm5, %v224_v5, 0.0  ;;  %v233_v9 = vsel %vm2048_vm8, %v222_v63, 0.0 }
  0xb5   :  { %1803 = vmatmul.mubr.msk.f32.vlgmr.msra.gmra.mrb[0].mxu0 %vm239_vm3, %v1800_v44  ;;  %1840 = vmatprep.subr.msk.mxu1 %vm243_vm1, %v234_v6 }
  0xb6   :  { %1806 = vmatpush1.msk.msra.mxu0 %vm243_vm1, %v231_v14  ;;  %978 = vmatprep.mubr.f32.mxu0 %v1890_v2 }
  0xb7   :  { %1838 = vmatmul.mubr.msk.f32.vlgmr.msra.gmra.mrb[0].mxu1 %vm239_vm3, %v1835_v7 }
  0xb8   :  { %1841 = vmatpush1.msk.msra.mxu1 %vm243_vm1, %v233_v9  ;;  %1739 = vmatprep.mubr.f32.mxu1 %v1890_v2 }
  0xbd   :  { %1807 = vmatmul.mubr.msk.f32.vlgmr.msra.gmra.mrb[0].mxu0 %vm239_vm3, %v1804_v10 }
  0xbf   :  { %1842 = vmatmul.mubr.msk.f32.vlgmr.msra.gmra.mrb[0].mxu1 %vm239_vm3, %v1839_v42 }
  0xc1   :  { %v990_v11 = vpop.permute.xlu0 %989 }
 0x190   :  { %v980_v12 = vpop.f32.mrb[0].mxu0 }
 0x191   :  { %v992_v13 = vadd.f32 %v990_v11, %v980_v12  ;;  %v982_v15 = vpop.f32.mrb[1].mxu0 }
 0x192   :  { %v993_v16 = vadd.f32 %v990_v11, %v982_v15  ;;  %v1741_v17 = vpop.f32.mrb[0].mxu1 }
 0x193   :  { %vm994_vm1 = vcmp.gt.f32.partialorder %v992_v13, 0.0  ;;  %v996_v2 = vmul.f32 0.05, %v992_v13  ;;  %v1748_v18 = vadd.f32 %v1741_v17, %v990_v11  ;;  %v1743_v19 = vpop.f32.mrb[1].mxu1 }
 0x194   :  { %vm995_vm6 = vcmp.gt.f32.partialorder %v993_v16, 0.0  ;;  %v997_v3 = vmul.f32 0.05, %v993_v16  ;;  %v1749_v20 = vadd.f32 %v1743_v19, %v990_v11 }
 0x195   :  { %v998_v21 = vsel %vm994_vm1, %v992_v13, %v996_v2  ;;  %vm1750_vm7 = vcmp.gt.f32.partialorder %v1748_v18, 0.0  ;;  %v1752_v22 = vmul.f32 0.05, %v1748_v18 }
 0x196   :  { %v999_v23 = vsel %vm995_vm6, %v993_v16, %v997_v3  ;;  %vm1751_vm8 = vcmp.gt.f32.partialorder %v1749_v20, 0.0  ;;  %v1753_v4 = vmul.f32 0.05, %v1749_v20 }
 0x197   :  { %v1002_v24 = vcombine.low %v998_v21, %v999_v23  ;;  %v1754_v26 = vsel %vm1750_vm7, %v1748_v18, %v1752_v22 }
 0x198   :  { %v1755_v28 = vsel %vm1751_vm8, %v1749_v20, %v1753_v4 }
 0x199   :  { %v1004_v29 = vsub.f32 %v1928_v0, %v1002_v24  ;;  %1005 = vst [vmem:[%s2262_s4] sm:$0xff] %v1002_v24  ;;  %v1758_v30 = vcombine.low %v1754_v26, %v1755_v28 }
 0x19b   :  { %1006 = vst [vmem:[%s2263_s3] sm:$0xff] %v1004_v29  ;;  %v1760_v31 = vsub.f32 %v1933_v1, %v1758_v30  ;;  %1843 = vst [vmem:[%s2262_s4 + $0x8] sm:$0xff] %v1758_v30 }
 0x19d   :  { %1844 = vst [vmem:[%s2263_s3 + $0x8] sm:$0xff] %v1760_v31 }

</bundles_post_ra>
